<compile_context>
chip_gen: v7x
topology: tpu7x:2x2x1
jax: 0.10.0
libtpu: 0.0.40
codegen_flags: <defaults>
</compile_context>

<pallas_src>
import jax
import jax.numpy as jnp
from jax.experimental import pallas as pl
from jax.experimental.pallas import tpu as pltpu

_LANE = 128


def _round_up(n, q):
    return ((n + q - 1) // q) * q


def _pick_tile(n, target, quantum=_LANE):
    """Largest multiple of `quantum` that divides n and is <= max(target, quantum).

    Assumes n is a multiple of `quantum` (we pad all tiled dims to 128)."""
    target = max(int(target), quantum)
    best = quantum
    t = quantum
    limit = min(n, target)
    while t <= limit:
        if n % t == 0:
            best = t
        t += quantum
    return best


def _vmem_capacity():
    try:
        return int(pltpu.get_tpu_info().vmem_capacity_bytes)
    except Exception:
        return 64 * 1024 * 1024  # conservative: v7x per-core VMEM


def _vmem_limit(tile_bytes, cap):
    want = int(tile_bytes * 1.4) + (4 << 20)
    return min(max(want, 32 << 20), int(cap * 0.7))


# ---------------- Kernel 1: xw_hat = d ⊙ (X @ W), blocked over F ----------------
def _transform_kernel(x_ref, w_ref, d_ref, o_ref, acc_ref):
    # x_ref: (1, TN, TF)  w_ref: (TF, Cp)  d_ref: (1, TN, 1) f32
    # o_ref: (1, TN, Cp)  acc_ref: (TN, Cp) f32 scratch
    f = pl.program_id(2)

    @pl.when(f == 0)
    def _():
        acc_ref[...] = jnp.zeros_like(acc_ref)

    acc_ref[...] += jnp.dot(x_ref[0], w_ref[...],
                            preferred_element_type=jnp.float32)

    @pl.when(f == pl.num_programs(2) - 1)
    def _():
        o_ref[0] = (d_ref[0] * acc_ref[...]).astype(o_ref.dtype)


# ---------------- Kernel 2: tiled aggregation (TM == TK == T) ----------------
def _aggregate_kernel(adj_ref, xwk_ref, d_ref, corr_ref, mask_ref, b_ref,
                      o_ref, acc_ref):
    # adj_ref: (1, T, T)    xwk_ref: (1, T, Cp)
    # d_ref/corr_ref/mask_ref: (1, T, 1) f32    b_ref: (1, Cp) f32
    # o_ref: (1, T, Cp)     acc_ref: (T, Cp) f32 scratch
    m = pl.program_id(1)
    k = pl.program_id(2)

    @pl.when(k == 0)
    def _():
        acc_ref[...] = jnp.zeros_like(acc_ref)

    acc_ref[...] += jnp.dot(adj_ref[0], xwk_ref[0],
                            preferred_element_type=jnp.float32)

    # Self-loop "set" correction: at k == m the resident xw_hat tile IS the
    # m-row block, so no separate (T, Cp) row-block stream is needed.
    @pl.when(k == m)
    def _():
        acc_ref[...] += corr_ref[0] * xwk_ref[0].astype(jnp.float32)

    @pl.when(k == pl.num_programs(2) - 1)
    def _():
        out = d_ref[0] * acc_ref[...] + b_ref[...]
        out = out * mask_ref[0]
        o_ref[0] = out.astype(o_ref.dtype)


def dense_gcn_conv(x, adj, weight, bias=None, mask=None, add_loop=True,
                   improved=False, compute_dtype=jnp.bfloat16):
    """Pallas implementation of DenseGCNConv.forward.

    `compute_dtype` is the dtype of the adjacency / xw_hat MXU operands
    (accumulation and all per-row scalars stay f32)."""
    if x.ndim == 2:
        x = x[None]
    if adj.ndim == 2:
        adj = adj[None]
    B, N, F = x.shape
    Ba = adj.shape[0]                       # 1 => adjacency shared over batch
    C = weight.shape[1]
    out_dtype = x.dtype
    loop_val = 2.0 if improved else 1.0

    # ----- pad to lane/sublane friendly shapes (zeros are semantically inert) -----
    Np = _round_up(N, _LANE)
    Fp = _round_up(F, _LANE)
    Cp = _round_up(C, _LANE)

    x_p = x if (Np == N and Fp == F) else jnp.pad(
        x, ((0, 0), (0, Np - N), (0, Fp - F)))
    w_p = weight if (Fp == F and Cp == C) else jnp.pad(
        weight, ((0, Fp - F), (0, Cp - C)))

    adj_c = adj if Np == N else jnp.pad(adj, ((0, 0), (0, Np - N), (0, Np - N)))
    adj_c = adj_c.astype(compute_dtype)     # pad + cast fuse into one XLA pass

    if bias is None:
        b_p = jnp.zeros((Cp,), jnp.float32)
    else:
        b_p = bias.astype(jnp.float32)
        if Cp != C:
            b_p = jnp.pad(b_p, (0, Cp - C))
    b2d = b_p.reshape(1, Cp)

    # ----- per-row glue: degrees + rank-1 self-loop correction (single bf16 read) -----
    # TODO(synk): the O(N^2) degree/diagonal pre-pass stays as XLA glue; the heavy
    # O(N^2*C) / O(N*F*C) matmuls run in the Pallas kernels below.
    deg = jnp.sum(adj_c, axis=-1, dtype=jnp.float32)               # (Ba, Np)
    if add_loop:
        diag = jnp.diagonal(adj_c, axis1=-2, axis2=-1).astype(jnp.float32)
        deg = deg - diag + loop_val
        corr = (loop_val - diag)[..., None]                        # (Ba, Np, 1)
    else:
        corr = jnp.zeros((Ba, Np, 1), jnp.float32)
    d = jax.lax.rsqrt(jnp.maximum(deg, 1.0))[..., None]            # (Ba, Np, 1)

    # Node mask, fused into kernel 2's epilogue as an f32 row vector.
    if mask is None:
        mask_p = jnp.ones((B, Np, 1), jnp.float32)
    else:
        m_r = jnp.broadcast_to(
            jnp.reshape(mask, (-1, N, 1)).astype(jnp.float32), (B, N, 1))
        mask_p = m_r if Np == N else jnp.pad(m_r, ((0, 0), (0, Np - N), (0, 0)))

    c_item = jnp.dtype(compute_dtype).itemsize
    x_item = jnp.dtype(x_p.dtype).itemsize
    w_item = jnp.dtype(w_p.dtype).itemsize
    o_item = jnp.dtype(out_dtype).itemsize

    cap = _vmem_capacity()
    budget = int(cap * 0.5)
    shared = (Ba == 1)

    # ---------------- Kernel 1: feature transform ----------------
    TN = _pick_tile(Np, 512)
    TF = _pick_tile(Fp, 512)

    def k1_bytes(tn, tf):
        return (2 * (tn * tf * x_item + tf * Cp * w_item + tn * 4
                     + tn * Cp * c_item) + tn * Cp * 4)

    while k1_bytes(TN, TF) > budget and (TF > _LANE or TN > _LANE):
        if TF > _LANE:
            TF = _pick_tile(Fp, TF // 2)
        else:
            TN = _pick_tile(Np, TN // 2)
    if B * (Np // TN) < 2 and Np >= 2 * _LANE:      # keep both v7x cores busy
        TN = _pick_tile(Np, Np // 2)

    d_row_k1 = (lambda b, n, f: (0, n, 0)) if shared else (lambda b, n, f: (b, n, 0))

    xw_hat = pl.pallas_call(
        _transform_kernel,
        out_shape=jax.ShapeDtypeStruct((B, Np, Cp), compute_dtype),
        grid_spec=pltpu.PrefetchScalarGridSpec(
            num_scalar_prefetch=0,
            grid=(B, Np // TN, Fp // TF),
            in_specs=[
                pl.BlockSpec((1, TN, TF), lambda b, n, f: (b, n, f)),   # x
                pl.BlockSpec((TF, Cp), lambda b, n, f: (f, 0)),         # weight
                pl.BlockSpec((1, TN, 1), d_row_k1),                     # d rows
            ],
            out_specs=pl.BlockSpec((1, TN, Cp), lambda b, n, f: (b, n, 0)),
            scratch_shapes=[pltpu.VMEM((TN, Cp), jnp.float32)],
        ),
        compiler_params=pltpu.CompilerParams(
            dimension_semantics=("parallel", "parallel", "arbitrary"),
            vmem_limit_bytes=_vmem_limit(k1_bytes(TN, TF), cap)),
    )(x_p, w_p, d)

    # ---------------- Kernel 2: tiled aggregation ----------------
    T = _pick_tile(Np, 1024)

    def k2_bytes(t):
        return (2 * (t * t * c_item + t * Cp * c_item + 3 * t * 4 + Cp * 4
                     + t * Cp * o_item) + t * Cp * 4)

    while k2_bytes(T) > budget and T > _LANE:
        T = _pick_tile(Np, T // 2)
    if B * (Np // T) < 2 and Np >= 2 * _LANE:       # v7x megacore occupancy
        T = _pick_tile(Np, Np // 2)

    adj_map = (lambda b, m, k: (0, m, k)) if shared else (lambda b, m, k: (b, m, k))
    row_map = (lambda b, m, k: (0, m, 0)) if shared else (lambda b, m, k: (b, m, 0))

    out = pl.pallas_call(
        _aggregate_kernel,
        out_shape=jax.ShapeDtypeStruct((B, Np, Cp), out_dtype),
        grid_spec=pltpu.PrefetchScalarGridSpec(
            num_scalar_prefetch=0,
            grid=(B, Np // T, Np // T),
            in_specs=[
                pl.BlockSpec((1, T, T), adj_map),                       # adj tile
                pl.BlockSpec((1, T, Cp), lambda b, m, k: (b, k, 0)),    # xw_hat[k]
                pl.BlockSpec((1, T, 1), row_map),                       # d[m]
                pl.BlockSpec((1, T, 1), row_map),                       # corr[m]
                pl.BlockSpec((1, T, 1), lambda b, m, k: (b, m, 0)),     # mask[m]
                pl.BlockSpec((1, Cp), lambda b, m, k: (0, 0)),          # bias
            ],
            out_specs=pl.BlockSpec((1, T, Cp), lambda b, m, k: (b, m, 0)),
            scratch_shapes=[pltpu.VMEM((T, Cp), jnp.float32)],
        ),
        compiler_params=pltpu.CompilerParams(
            dimension_semantics=("parallel", "parallel", "arbitrary"),
            vmem_limit_bytes=_vmem_limit(k2_bytes(T), cap)),
    )(adj_c, xw_hat, d, corr, mask_p, b2d)

    return out[:, :N, :C]


def _reference(x, adj, weight, bias, mask=None, add_loop=True, improved=False):
    if x.ndim == 2:
        x = x[None]
    if adj.ndim == 2:
        adj = adj[None]
    _, N, _ = adj.shape
    if add_loop:
        eye = jnp.eye(N, dtype=adj.dtype)
        adj = adj * (1.0 - eye) + eye * (2.0 if improved else 1.0)
    out = jnp.matmul(x, weight)
    deg_inv_sqrt = jnp.maximum(adj.sum(-1), 1.0) ** -0.5
    adj = deg_inv_sqrt[..., :, None] * adj * deg_inv_sqrt[..., None, :]
    out = jnp.matmul(adj, out)
    if bias is not None:
        out = out + bias
    if mask is not None:
        out = out * jnp.reshape(mask, (-1, N, 1)).astype(x.dtype)
    return out


if __name__ == "__main__":
    B, N, F, C = 2, 8, 16, 32

    key = jax.random.PRNGKey(0)
    kx, ka, kw, km = jax.random.split(key, 4)

    x = jax.random.normal(kx, (B, N, F), dtype=jnp.float32)
    # Random symmetric 0/1 adjacency (no self loops; forward adds them).
    a = (jax.random.uniform(ka, (B, N, N)) > 0.5).astype(jnp.float32)
    adj = jnp.maximum(a, jnp.transpose(a, (0, 2, 1)))
    adj = adj * (1.0 - jnp.eye(N, dtype=jnp.float32))

    # Deterministic xavier_uniform_-style init for weight, zeros for bias.
    bound = (6.0 / (F + C)) ** 0.5
    weight = jax.random.uniform(kw, (F, C), minval=-bound, maxval=bound,
                                dtype=jnp.float32)
    bias = jnp.zeros((C,), dtype=jnp.float32)

    # Case 1: batched adjacency, f32 compute path (tight structural check).
    out = jax.block_until_ready(
        dense_gcn_conv(x, adj, weight, bias, compute_dtype=jnp.float32))
    ref = _reference(x, adj, weight, bias)
    assert out.shape == (B, N, C)
    assert jnp.allclose(out, ref, atol=1e-4, rtol=1e-4)

    # Case 2: shared adjacency (Ba=1), node mask, improved=True, bf16 MXU path.
    adj_shared = adj[:1]
    mask = (jax.random.uniform(km, (B, N)) > 0.3).astype(jnp.float32)
    out2 = jax.block_until_ready(
        dense_gcn_conv(x, adj_shared, weight, bias, mask=mask, improved=True))
    ref2 = _reference(x, adj_shared, weight, bias, mask=mask, improved=True)
    assert jnp.allclose(out2, ref2, atol=5e-2, rtol=5e-2)

    # Case 3: add_loop=False, no bias, bf16 MXU path.
    out3 = jax.block_until_ready(
        dense_gcn_conv(x, adj, weight, None, add_loop=False))
    ref3 = _reference(x, adj, weight, None, add_loop=False)
    assert jnp.allclose(out3, ref3, atol=5e-2, rtol=5e-2)

    print("KERNEL_OK")
</pallas_src>

<mosaic_0001>
module attributes {stable_mosaic.version = 11 : i64} {
  func.func @_transform_kernel(%arg0: i32, %arg1: i32, %arg2: i32, %arg3: memref<1x128x128xf32, #tpu.memory_space<vmem>>, %arg4: memref<128x128xf32, #tpu.memory_space<vmem>>, %arg5: memref<1x128x1xf32, #tpu.memory_space<vmem>>, %arg6: memref<1x128x128xf32, #tpu.memory_space<vmem>>, %arg7: memref<128x128xf32, #tpu.memory_space<vmem>>) attributes {dimension_semantics = [#tpu.dimension_semantics<parallel>, #tpu.dimension_semantics<parallel>, #tpu.dimension_semantics<arbitrary>], iteration_bounds = array<i64: 2, 1, 1>, scalar_prefetch = 0 : i64, scratch_operands = 1 : i64, tpu.core_type = #tpu.core_type<tc>, window_params = [{transform_indices = @transform_0, window_bounds = array<i64: 1, 128, 128>}, {transform_indices = @transform_1, window_bounds = array<i64: 128, 128>}, {transform_indices = @transform_2, window_bounds = array<i64: 1, 128, 1>}, {transform_indices = @transform_3, window_bounds = array<i64: 1, 128, 128>}]} {
    %c0_i32 = arith.constant 0 : i32
    %0 = arith.cmpi eq, %arg2, %c0_i32 : i32
    %1 = arith.extui %0 : i1 to i32
    %c0_i32_0 = arith.constant 0 : i32
    %2 = arith.cmpi ne, %1, %c0_i32_0 : i32
    scf.if %2 {
      %cst_11 = arith.constant 0.000000e+00 : f32
      %13 = vector.broadcast %cst_11 : f32 to vector<128x128xf32>
      %c0_12 = arith.constant 0 : index
      %c0_13 = arith.constant 0 : index
      %14 = vector.load %arg7[%c0_12, %c0_13] : memref<128x128xf32, #tpu.memory_space<vmem>>, vector<128x128xf32>
      tpu.vector_store %arg7[%c0_12, %c0_13], %13 {strides = array<i32>} : memref<128x128xf32, #tpu.memory_space<vmem>>, vector<128x128xf32>,
    } else {
    }
    %c0 = arith.constant 0 : index
    %c0_1 = arith.constant 0 : index
    %3 = vector.load %arg7[%c0, %c0_1] : memref<128x128xf32, #tpu.memory_space<vmem>>, vector<128x128xf32>
    %c0_2 = arith.constant 0 : index
    %c0_3 = arith.constant 0 : index
    %c0_4 = arith.constant 0 : index
    %4 = vector.load %arg3[%c0_2, %c0_3, %c0_4] : memref<1x128x128xf32, #tpu.memory_space<vmem>>, vector<1x128x128xf32>
    %5 = vector.shape_cast %4 : vector<1x128x128xf32> to vector<128x128xf32>
    %c0_5 = arith.constant 0 : index
    %c0_6 = arith.constant 0 : index
    %6 = vector.load %arg4[%c0_5, %c0_6] : memref<128x128xf32, #tpu.memory_space<vmem>>, vector<128x128xf32>
    %cst = arith.constant dense<0.000000e+00> : vector<128x128xf32>
    %7 = tpu.matmul %5, %6, %cst {dimension_numbers = #tpu.dot_dimension_numbers<[1], [0], [0], [1], [0, 0, 1, 1], [], []>} : vector<128x128xf32>, vector<128x128xf32>, vector<128x128xf32> -> vector<128x128xf32>
    %8 = arith.addf %3, %7 : vector<128x128xf32>
    %c0_7 = arith.constant 0 : index
    %c0_8 = arith.constant 0 : index
    %9 = vector.load %arg7[%c0_7, %c0_8] : memref<128x128xf32, #tpu.memory_space<vmem>>, vector<128x128xf32>
    tpu.vector_store %arg7[%c0_7, %c0_8], %8 {strides = array<i32>} : memref<128x128xf32, #tpu.memory_space<vmem>>, vector<128x128xf32>,
    %c0_i32_9 = arith.constant 0 : i32
    %10 = arith.cmpi eq, %arg2, %c0_i32_9 : i32
    %11 = arith.extui %10 : i1 to i32
    %c0_i32_10 = arith.constant 0 : i32
    %12 = arith.cmpi ne, %11, %c0_i32_10 : i32
    scf.if %12 {
      %c0_11 = arith.constant 0 : index
      %c0_12 = arith.constant 0 : index
      %c0_13 = arith.constant 0 : index
      %13 = vector.load %arg5[%c0_11, %c0_12, %c0_13] : memref<1x128x1xf32, #tpu.memory_space<vmem>>, vector<1x128x1xf32>
      %14 = vector.shape_cast %13 : vector<1x128x1xf32> to vector<128x1xf32>
      %c0_14 = arith.constant 0 : index
      %c0_15 = arith.constant 0 : index
      %15 = vector.load %arg7[%c0_14, %c0_15] : memref<128x128xf32, #tpu.memory_space<vmem>>, vector<128x128xf32>
      %16 = vector.broadcast %14 : vector<128x1xf32> to vector<128x128xf32>
      %17 = arith.mulf %16, %15 : vector<128x128xf32>
      %c0_16 = arith.constant 0 : index
      %c0_17 = arith.constant 0 : index
      %c0_18 = arith.constant 0 : index
      %18 = vector.load %arg6[%c0_16, %c0_17, %c0_18] : memref<1x128x128xf32, #tpu.memory_space<vmem>>, vector<1x128x128xf32>
      %19 = vector.shape_cast %18 : vector<1x128x128xf32> to vector<128x128xf32>
      %20 = vector.shape_cast %17 : vector<128x128xf32> to vector<1x128x128xf32>
      tpu.vector_store %arg6[%c0_16, %c0_17, %c0_18], %20 {strides = array<i32>} : memref<1x128x128xf32, #tpu.memory_space<vmem>>, vector<1x128x128xf32>,
    } else {
    }
    return
  }
  func.func @transform_0(%arg0: i32, %arg1: i32, %arg2: i32) -> (i32, i32, i32) {
    %c0_i32 = arith.constant 0 : i32
    return %arg0, %arg1, %arg2 : i32, i32, i32
  }
  func.func @transform_1(%arg0: i32, %arg1: i32, %arg2: i32) -> (i32, i32) {
    %c0_i32 = arith.constant 0 : i32
    %c0_i32_0 = arith.constant 0 : i32
    return %arg2, %c0_i32 : i32, i32
  }
  func.func @transform_2(%arg0: i32, %arg1: i32, %arg2: i32) -> (i32, i32, i32) {
    %c0_i32 = arith.constant 0 : i32
    %c0_i32_0 = arith.constant 0 : i32
    return %arg0, %arg1, %c0_i32 : i32, i32, i32
  }
  func.func @transform_3(%arg0: i32, %arg1: i32, %arg2: i32) -> (i32, i32, i32) {
    %c0_i32 = arith.constant 0 : i32
    %c0_i32_0 = arith.constant 0 : i32
    return %arg0, %arg1, %c0_i32 : i32, i32, i32
  }
}

</mosaic_0001>

<bundles_post_ra>
// kernel: tpu_custom_call.1
= control target key start
LH: loop header
LB: loop body
LE: loop exit
PB: predicated region body
PF: predicated region fallthrough
CT: control target
= control target key end

     0   :  { %8 = vsyncpa [#allocation4], 0  ;;  %s1386_s0 = inlined_call_operand.vmem [shape: f32[2,128,128], index: 0, kind: input, shape index: {}]   ;;  %s1387_s1 = inlined_call_operand.hbm [shape: f32[128,128], index: 1, kind: input, shape index: {}]   ;;  %s1388_s2 = inlined_call_operand.vmem [shape: f32[2,128,1], index: 2, kind: input, shape index: {}]   ;;  %s1389_s3 = inlined_call_operand.hbm [shape: f32[2,128,128], index: 3, kind: output, shape index: {}]  }
   0x1   :  { %9 = vsyncpa [#allocation5], 0 }
   0x2   :  { %11 = vsyncpa [#allocation5 + $0x1], 0  ;;  %s1171_s12 = smov 0   ;;  %s1173_s13 = smov 0  }
   0x3   :  { %s1175_s14 = smov 0   ;;  %s1177_s15 = smov 0  }
   0x4   :  { %s1179_s16 = smov 0   ;;  %s1181_s17 = smov 0  }
   0x5 LB: > { %s803_s18 = sadd.s32 4294967295, %s1142_s17   ;;  %s804_s19 = sadd.s32 4294967294, %s1142_s17   ;;  %s1142_s17 = sphi %s1181_s17, %s17_s17   ;;  %s1138_s16 = sphi %s1179_s16, %s1407_s16   ;;  %s1134_s15 = sphi %s1177_s15, %s1406_s15   ;;  %s1130_s14 = sphi %s1175_s14, %s1405_s14   ;;  %s1126_s13 = sphi %s1173_s13, %s1404_s13   ;;  %s1122_s12 = sphi %s1171_s12, %s1403_s12  }
   0x6   : > { %s36_s20 = sadd.s32 1, %s1138_s16  ;;  %s129_s21 = sadd.s32 1, %s1130_s14 }
   0x7   : > { %p38_p0 = scmp.ge.s32.totalorder %s36_s20, 2  ;;  %p139_p1 = scmp.ne.s32.totalorder %s1130_s14, %s1126_s13 }
   0x8   : > { %p140_p2 = scmp.eq.s32.totalorder %s803_s18, 1  ;;  %p145_p3 = scmp.ne.s32.totalorder %s1126_s13, %s1122_s12 }
   0x9   : > { %s1409_s20 = smov (%p38_p0, %s36_s20), 0  ;;  %p146_p5 = scmp.eq.s32.totalorder %s804_s19, 1 }
   0xa   : > { %p1211_p4 = por %p140_p2, %p139_p1  ;;  %s124_s23 = ssub.s32 %s1138_s16, %s1409_s20 }
   0xb   : > { %p805_p6 = scmp.ge.s32.totalorder %s1142_s17, 1  ;;  %p127_p7 = scmp.eq.s32.totalorder %s124_s23, 0 }
   0xc   : > { %s1394_s22 = scalar_select %p1211_p4, 1, 0 }
   0xd   : > { %p1218_p8 = por %p146_p5, %p145_p3  ;;  %p153_p9 = scmp.lt.s32.totalorder %s1142_s17, 3 }
   0xe   : > { %s1224_s25 = scalar_select %p127_p7, %s1130_s14, %s129_s21  }
   0xf   : > { %s1395_s24 = scalar_select %p1218_p8, 1, 0 }
  0x10   : > { %p1226_p10 = pnand %p805_p6, %p153_p9  ;;  %p1230_p11 = scmp.eq.s32.totalorder %s803_s18, 0 }
  0x11   : > { %s1144_s28 = smov [#allocation3]   ;;  %s1032_s6 = scalar_lea.hbm %s1387_s1, 2048 }
  0x12   : > { %s1396_s26 = scalar_select %p1226_p10, 1, 0 }
  0x13   : > { %s1397_s27 = scalar_select %p1230_p11, 1, 0 }
  0x14   : > { %p965_p12 = pneg %p1226_p10  ;;  %s168_s29 = sshll.u32 %s1144_s28, 4  ;;  %s169_s29 = int_to_ptr.vmem [resolvable:$true] %s168_s29 }
  0x15   : > { %p1033_p0 = scmp.ne.s32.totalorder %s1387_s1, %s1032_s6  ;;  %p1039_p5 = scmp.lt.u32.totalorder %s1032_s6, %s1387_s1 }
  0x16   : > { %p1238_p13 = pnand %p1230_p11, %p965_p12 }
  0x18   : > { %p1034_p1 = pneg %p1238_p13 }
  0x1a   : > { %p1035_p2 = pnand %p1034_p1, %p1033_p0 }
  0x1c   : > { %p1036_p3 = pneg %p1035_p2 }
  0x1e   : > { %p1041_p6 = pnand %p1039_p5, %p1036_p3 }
  0x20   : > { %1044 = shalt.err (!%p1041_p6)
}
  0x21   : > { %s1045_s11 = scalar_lea.vmem %s169_s29, 2048  ;;  %p1053_p8 = scmp.lt.s32.totalorder %s169_s29, %s169_s29 }
  0x22   : > { %p1046_p7 = scmp.ne.s32.totalorder %s169_s29, %s1045_s11  ;;  %p1054_p4 = scmp.lt.s32.totalorder %s1045_s11, %s1045_s11 }
  0x24   : > { %p1048_p9 = pnand %p1046_p7, %p1034_p1  ;;  %p1055_p11 = por %p1054_p4, %p1053_p8 }
  0x26   : > { %p1049_p12 = pneg %p1048_p9 }
  0x28   : > { %p1056_p10 = pnand %p1055_p11, %p1049_p12 }
  0x2a   : > { %1059 = shalt.err (!%p1056_p10)
}
  0x2b   : > { %s1145_s18 = smov 128   ;;  %s1146_s19 = smov 8  }
  0x2c   : > { %968 = dma.hbm_to_vmem [thread:$0]  (!%p1238_p13), %s1387_s1, 2048, %s169_s29, [#allocation4], %s1145_s18, %s1145_s18, %s1146_s19  }
  0x2d   : > { %p1399_p0 = scmp.ne.s32.totalorder %s1396_s26, 0 }
  0x2e   : > { %p1400_p2 = scmp.ne.s32.totalorder (!%p1399_p0), %s1397_s27, 0 }
  0x2f   : > { %213 = sbr.rel (%p1399_p0) target bundleno = 333 (0x14d), region = 32 }
  0x36   : > { %1113 = dma.done.wait (%p1400_p2), [#allocation4], 2048  }
  0x37   : > { %1115 = vsyncadd (%p1400_p2), [#allocation4], 4294965248  ;;  %p254_p4 = scmp.lt.s32.totalorder %s1134_s15, 1  ;;  %v1147_v0 = vmov 0   ;;  %v330_v1 = vld [vmem:[#allocation3] sm:$0xff]  ;;  %v331_v2 = vld [vmem:[#allocation3 + $0x8] sm:$0xff] }
  0x38   : > { %1031 = vset.pattern.permute.xlu1 %v1147_v0  ;;  %1030 = vset.pattern.permute.xlu0 %v1147_v0  ;;  %v332_v3 = vld [vmem:[#allocation3 + $0x10] sm:$0xff]  ;;  %v911_v4 = vpack.c.bf16 %v331_v2, %v330_v1  ;;  %v333_v5 = vld [vmem:[#allocation3 + $0x18] sm:$0xff]  ;;  %v334_v7 = vld [vmem:[#allocation3 + $0x20] sm:$0xff]  ;;  %s250_s7 = sand.u32 1, %s1126_s13   ;;  %s822_s10 = sshll.u32 %s1134_s15, 11 }
  0x39   : > { %s255_s28 = scalar_select %p254_p4, %s1134_s15, 1  ;;  %v915_v6 = vpack.c.bf16 %v333_v5, %v332_v3  ;;  %v335_v8 = vld [vmem:[#allocation3 + $0x28] sm:$0xff]  ;;  %v336_v12 = vld [vmem:[#allocation3 + $0x30] sm:$0xff]  ;;  %v337_v13 = vld [vmem:[#allocation3 + $0x38] sm:$0xff] }
  0x3a   : > { %912 = vmatprep.subr.bf16.mxu0 %v911_v4  ;;  %943 = vmatprep.subr.bf16.mxu1 %v911_v4  ;;  %v919_v9 = vpack.c.bf16 %v335_v8, %v334_v7  ;;  %v923_v14 = vpack.c.bf16 %v337_v13, %v336_v12  ;;  %v338_v15 = vld [vmem:[#allocation3 + $0x40] sm:$0xff]  ;;  %v339_v16 = vld [vmem:[#allocation3 + $0x48] sm:$0xff]  ;;  %v340_v21 = vld [vmem:[#allocation3 + $0x50] sm:$0xff]  ;;  %s810_s8 = sshll.u32 %s250_s7, 7  ;;  %s1330_s19 = scalar_lea.hbm %s1389_s3, %s822_s10 }
  0x3b   : > { %s820_s30 = sshll.u32 %s255_s28, 7  ;;  %914 = vmatpush3.bf16.msra.mxu0 %v911_v4  ;;  %951 = vmatpush3.bf16.msra.mxu1 %v911_v4  ;;  %v927_v20 = vpack.c.bf16 %v339_v16, %v338_v15  ;;  %v341_v22 = vld [vmem:[#allocation3 + $0x58] sm:$0xff]  ;;  %v342_v26 = vld [vmem:[#allocation3 + $0x60] sm:$0xff]  ;;  %v343_v27 = vld [vmem:[#allocation3 + $0x68] sm:$0xff]  ;;  %s1311_s9 = scalar_lea.vmem [#allocation6], %s810_s8 }
  0x3c   : > { %s1269_s27 = scalar_lea.vmem %s1386_s0, %s820_s30  ;;  %916 = vmatprep.subr.bf16.mxu0 %v915_v6  ;;  %944 = vmatprep.subr.bf16.mxu1 %v915_v6  ;;  %s1276_s6 = scalar_lea.vmem %s1388_s2, %s820_s30  ;;  %v931_v25 = vpack.c.bf16 %v341_v22, %v340_v21  ;;  %v935_v30 = vpack.c.bf16 %v343_v27, %v342_v26  ;;  %v344_v31 = vld [vmem:[#allocation3 + $0x70] sm:$0xff]  ;;  %v345_v32 = vld [vmem:[#allocation3 + $0x78] sm:$0xff] }
  0x3d   : > { %v314_v10 = vld [vmem:[%s1269_s27] sm:$0xff]  ;;  %v528_v17 = vld [vmem:[%s1276_s6 + $0x10] sm:$0xff]  ;;  %v529_v19 = vld [vmem:[%s1276_s6 + $0x18] sm:$0xff]  ;;  %v939_v35 = vpack.c.bf16 %v345_v32, %v344_v31  ;;  %s686_s11 = sshll.u32 %s1311_s9, 4  ;;  %s1340_s21 = scalar_lea.sflag [#allocation5], %s250_s7  ;;  %s1332_s11 = int_to_ptr.vmem [resolvable:$true] %s686_s11 }
  0x3e   : > { %v322_v11 = vld [vmem:[%s1269_s27 + $0x40] sm:$0xff]  ;;  %887 = vmatprep.mubr.f32.mxu0 %v314_v10  ;;  %570 = vperm.xlu1 %1031, %v528_v17   ;;  %v527_v23 = vld [vmem:[%s1276_s6 + $0x8] sm:$0xff]  ;;  %v533_v29 = vld [vmem:[%s1276_s6 + $0x38] sm:$0xff]  ;;  %s1060_s23 = scalar_lea.vmem %s1332_s11, 2048  ;;  %p1401_p10 = scmp.ne.s32.totalorder %s1394_s22, 0 }
  0x3f   : > { %899 = vmatprep.mubr.f32.mxu1 %v322_v11  ;;  %918 = vmatpush3.bf16.msra.mxu0 %v915_v6  ;;  %v526_v18 = vld [vmem:[%s1276_s6] sm:$0xff]  ;;  %v531_v24 = vld [vmem:[%s1276_s6 + $0x28] sm:$0xff]  ;;  %v532_v33 = vld [vmem:[%s1276_s6 + $0x30] sm:$0xff]  ;;  %p1061_p8 = scmp.ne.s32.totalorder %s1332_s11, %s1060_s23  ;;  %s1148_s28 = smov [#allocation6]  }
  0x40   : > { %952 = vmatpush3.bf16.msra.mxu1 %v915_v6  ;;  %920 = vmatprep.subr.bf16.mxu0 %v919_v9  ;;  %v530_v28 = vld [vmem:[%s1276_s6 + $0x20] sm:$0xff]  ;;  %v535_v34 = vld [vmem:[%s1276_s6 + $0x48] sm:$0xff]  ;;  %v537_v37 = vld [vmem:[%s1276_s6 + $0x58] sm:$0xff]  ;;  %s1064_s30 = sshll.u32 %s1148_s28, 4  ;;  %s1065_s30 = int_to_ptr.vmem [resolvable:$false] %s1064_s30 }
  0x41   : > { %945 = vmatprep.subr.bf16.mxu1 %v919_v9  ;;  %560 = vperm.xlu0 %1030, %v526_v18   ;;  %v534_v36 = vld [vmem:[%s1276_s6 + $0x40] sm:$0xff]  ;;  %v536_v38 = vld [vmem:[%s1276_s6 + $0x50] sm:$0xff]  ;;  %v315_v39 = vld [vmem:[%s1269_s27 + $0x8] sm:$0xff]  ;;  %p1062_p11 = pnand %p1061_p8, %p1401_p10  ;;  %s1066_s26 = scalar_lea.vmem %s1065_s30, 4096 }
  0x42   : > { %575 = vperm.xlu1 %1031, %v529_v19   ;;  %v323_v40 = vld [vmem:[%s1269_s27 + $0x48] sm:$0xff]  ;;  %v316_v41 = vld [vmem:[%s1269_s27 + $0x10] sm:$0xff]  ;;  %v538_v44 = vld [vmem:[%s1276_s6 + $0x60] sm:$0xff]  ;;  %p1067_p1 = scmp.lt.s32.totalorder %s1332_s11, %s1065_s30  ;;  %p1068_p3 = scmp.lt.s32.totalorder %s1066_s26, %s1060_s23 }
  0x43   : > { %922 = vmatpush3.bf16.msra.mxu0 %v919_v9  ;;  %v324_v42 = vld [vmem:[%s1269_s27 + $0x50] sm:$0xff]  ;;  %v539_v43 = vld [vmem:[%s1276_s6 + $0x68] sm:$0xff]  ;;  %v317_v45 = vld [vmem:[%s1269_s27 + $0x18] sm:$0xff]  ;;  %p1063_p13 = pneg %p1062_p11 }
  0x44   : > { %953 = vmatpush3.bf16.msra.mxu1 %v919_v9  ;;  %924 = vmatprep.subr.bf16.mxu0 %v923_v14  ;;  %v325_v46 = vld [vmem:[%s1269_s27 + $0x58] sm:$0xff]  ;;  %v318_v47 = vld [vmem:[%s1269_s27 + $0x20] sm:$0xff]  ;;  %v540_v50 = vld [vmem:[%s1276_s6 + $0x70] sm:$0xff]  ;;  %p1069_p5 = por %p1068_p3, %p1067_p1 }
  0x45   : > { %946 = vmatprep.subr.bf16.mxu1 %v923_v14  ;;  %565 = vperm.xlu0 %1030, %v527_v23   ;;  %v326_v48 = vld [vmem:[%s1269_s27 + $0x60] sm:$0xff]  ;;  %v541_v49 = vld [vmem:[%s1276_s6 + $0x78] sm:$0xff]  ;;  %v319_v51 = vld [vmem:[%s1269_s27 + $0x28] sm:$0xff] }
  0x46   : > { %585 = vperm.xlu1 %1031, %v531_v24   ;;  %v327_v52 = vld [vmem:[%s1269_s27 + $0x68] sm:$0xff]  ;;  %v320_v53 = vld [vmem:[%s1269_s27 + $0x30] sm:$0xff]  ;;  %v321_v55 = vld [vmem:[%s1269_s27 + $0x38] sm:$0xff]  ;;  %p1070_p6 = pnand %p1069_p5, %p1063_p13 }
  0x47   : > { %926 = vmatpush3.bf16.msra.mxu0 %v923_v14  ;;  %v328_v54 = vld [vmem:[%s1269_s27 + $0x70] sm:$0xff]  ;;  %v329_v56 = vld [vmem:[%s1269_s27 + $0x78] sm:$0xff] }
  0x48   : > { %954 = vmatpush3.bf16.msra.mxu1 %v923_v14  ;;  %928 = vmatprep.subr.bf16.mxu0 %v927_v20 }
  0x49   : > { %947 = vmatprep.subr.bf16.mxu1 %v927_v20  ;;  %580 = vperm.xlu0 %1030, %v530_v28  }
  0x4a   : > { %595 = vperm.xlu1 %1031, %v533_v29  }
  0x4b   : > { %930 = vmatpush3.bf16.msra.mxu0 %v927_v20 }
  0x4c   : > { %955 = vmatpush3.bf16.msra.mxu1 %v927_v20  ;;  %932 = vmatprep.subr.bf16.mxu0 %v931_v25 }
  0x4d   : > { %948 = vmatprep.subr.bf16.mxu1 %v931_v25  ;;  %590 = vperm.xlu0 %1030, %v532_v33  }
  0x4e   : > { %605 = vperm.xlu1 %1031, %v535_v34  }
  0x4f   : > { %934 = vmatpush3.bf16.msra.mxu0 %v931_v25 }
  0x50   : > { %956 = vmatpush3.bf16.msra.mxu1 %v931_v25  ;;  %936 = vmatprep.subr.bf16.mxu0 %v935_v30 }
  0x51   : > { %949 = vmatprep.subr.bf16.mxu1 %v935_v30  ;;  %600 = vperm.xlu0 %1030, %v534_v36  }
  0x52   : > { %615 = vperm.xlu1 %1031, %v537_v37  }
  0x53   : > { %938 = vmatpush3.bf16.msra.mxu0 %v935_v30 }
  0x54   : > { %957 = vmatpush3.bf16.msra.mxu1 %v935_v30  ;;  %940 = vmatprep.subr.bf16.mxu0 %v939_v35 }
  0x55   : > { %950 = vmatprep.subr.bf16.mxu1 %v939_v35  ;;  %610 = vperm.xlu0 %1030, %v536_v38  }
  0x56   : > { %625 = vperm.xlu1 %1031, %v539_v43  }
  0x57   : > { %942 = vmatpush3.bf16.msra.mxu0 %v939_v35 }
  0x58   : > { %958 = vmatpush3.bf16.msra.mxu1 %v939_v35 }
  0x59   : > { %620 = vperm.xlu0 %1030, %v538_v44  }
  0x5a   : > { %888 = vmatmul.mubr.f32.vlgmr.msra.gmra.mrb[0].mxu0 %v315_v39  ;;  %635 = vperm.xlu1 %1031, %v541_v49  }
  0x5b   : > { %900 = vmatmul.mubr.f32.vlgmr.msra.gmra.mrb[0].mxu1 %v323_v40  ;;  %890 = vmatprep.mubr.f32.mxu0 %v316_v41 }
  0x5c   : > { %902 = vmatprep.mubr.f32.mxu1 %v324_v42 }
  0x5d   : > { %630 = vperm.xlu0 %1030, %v540_v50  }
  0x5e   : > { %891 = vmatmul.mubr.f32.gmra.mrb[2].mxu0 %v317_v45 }
  0x5f   : > { %903 = vmatmul.mubr.f32.gmra.mrb[2].mxu1 %v325_v46  ;;  %893 = vmatprep.mubr.f32.mxu0 %v318_v47 }
  0x60   : > { %905 = vmatprep.mubr.f32.mxu1 %v326_v48 }
  0x62   : > { %894 = vmatmul.mubr.f32.gmra.mrb[4].mxu0 %v319_v51 }
  0x63   : > { %906 = vmatmul.mubr.f32.gmra.mrb[4].mxu1 %v327_v52  ;;  %896 = vmatprep.mubr.f32.mxu0 %v320_v53 }
  0x64   : > { %908 = vmatprep.mubr.f32.mxu1 %v328_v54 }
  0x66   : > { %897 = vmatmul.mubr.f32.gmra.mrb[6].mxu0 %v321_v55 }
  0x67   : > { %909 = vmatmul.mubr.f32.gmra.mrb[6].mxu1 %v329_v56 }
  0xbd   : > { %v571_v57 = vpop.permute.xlu1 %570 }
  0xc0   : > { %v561_v58 = vpop.permute.xlu0 %560 }
  0xc1   : > { %v576_v59 = vpop.permute.xlu1 %575 }
  0xc4   : > { %v566_v60 = vpop.permute.xlu0 %565 }
  0xc5   : > { %v586_v61 = vpop.permute.xlu1 %585 }
  0xc8   : > { %v581_v62 = vpop.permute.xlu0 %580 }
  0xc9   : > { %v596_v63 = vpop.permute.xlu1 %595 }
  0xcc   : > { %v591_v0 = vpop.permute.xlu0 %590 }
  0xcd   : > { %v606_v1 = vpop.permute.xlu1 %605 }
  0xd0   : > { %v601_v2 = vpop.permute.xlu0 %600 }
  0xd1   : > { %v616_v3 = vpop.permute.xlu1 %615 }
  0xd4   : > { %v611_v4 = vpop.permute.xlu0 %610 }
  0xd5   : > { %v626_v13 = vpop.permute.xlu1 %625 }
  0xd8   : > { %v621_v14 = vpop.permute.xlu0 %620 }
  0xd9   : > { %v636_v31 = vpop.permute.xlu1 %635 }
  0xdc   : > { %v631_v32 = vpop.permute.xlu0 %630 }
 0x12d   : > { %v889_v5 = vpop.f32.mrb[0].mxu0 }
 0x12e   : > { %v901_v6 = vpop.f32.mrb[0].mxu1  ;;  %v639_v7 = vmul.f32 %v889_v5, %v566_v60  ;;  %v412_v9 = vpop.f32.mrb[1].mxu0 }
 0x12f   : > { %v647_v8 = vmul.f32 %v901_v6, %v606_v1  ;;  %v452_v10 = vpop.f32.mrb[1].mxu1  ;;  %v638_v11 = vmul.f32 %v561_v58, %v412_v9 }
 0x130   : > { %v646_v12 = vmul.f32 %v601_v2, %v452_v10  ;;  %655 = vst [vmem:[%s1311_s9 + $0x8] sm:$0xff] %v639_v7 }
 0x131   : > { %663 = vst [vmem:[%s1311_s9 + $0x48] sm:$0xff] %v647_v8  ;;  %654 = vst [vmem:[%s1311_s9] sm:$0xff] %v638_v11  ;;  %v892_v15 = vpop.f32.mrb[2].mxu0 }
 0x132   : > { %662 = vst [vmem:[%s1311_s9 + $0x40] sm:$0xff] %v646_v12  ;;  %v904_v16 = vpop.f32.mrb[2].mxu1  ;;  %v641_v17 = vmul.f32 %v892_v15, %v576_v59  ;;  %v422_v19 = vpop.f32.mrb[3].mxu0 }
 0x133   : > { %v649_v18 = vmul.f32 %v904_v16, %v616_v3  ;;  %v462_v20 = vpop.f32.mrb[3].mxu1  ;;  %v640_v21 = vmul.f32 %v571_v57, %v422_v19 }
 0x134   : > { %v648_v22 = vmul.f32 %v611_v4, %v462_v20  ;;  %657 = vst [vmem:[%s1311_s9 + $0x18] sm:$0xff] %v641_v17 }
 0x135   : > { %665 = vst [vmem:[%s1311_s9 + $0x58] sm:$0xff] %v649_v18  ;;  %656 = vst [vmem:[%s1311_s9 + $0x10] sm:$0xff] %v640_v21  ;;  %v895_v23 = vpop.f32.mrb[4].mxu0 }
 0x136   : > { %664 = vst [vmem:[%s1311_s9 + $0x50] sm:$0xff] %v648_v22  ;;  %v907_v24 = vpop.f32.mrb[4].mxu1  ;;  %v643_v25 = vmul.f32 %v895_v23, %v586_v61  ;;  %v432_v27 = vpop.f32.mrb[5].mxu0 }
 0x137   : > { %v651_v26 = vmul.f32 %v907_v24, %v626_v13  ;;  %v472_v28 = vpop.f32.mrb[5].mxu1  ;;  %v642_v29 = vmul.f32 %v581_v62, %v432_v27 }
 0x138   : > { %v650_v30 = vmul.f32 %v621_v14, %v472_v28  ;;  %659 = vst [vmem:[%s1311_s9 + $0x28] sm:$0xff] %v643_v25 }
 0x139   : > { %667 = vst [vmem:[%s1311_s9 + $0x68] sm:$0xff] %v651_v26  ;;  %658 = vst [vmem:[%s1311_s9 + $0x20] sm:$0xff] %v642_v29  ;;  %v898_v33 = vpop.f32.mrb[6].mxu0 }
 0x13a   : > { %666 = vst [vmem:[%s1311_s9 + $0x60] sm:$0xff] %v650_v30  ;;  %v910_v34 = vpop.f32.mrb[6].mxu1  ;;  %v645_v35 = vmul.f32 %v898_v33, %v596_v63  ;;  %v442_v37 = vpop.f32.mrb[7].mxu0 }
 0x13b   : > { %v653_v36 = vmul.f32 %v910_v34, %v636_v31  ;;  %v482_v38 = vpop.f32.mrb[7].mxu1  ;;  %v644_v39 = vmul.f32 %v591_v0, %v442_v37 }
 0x13c   : > { %v652_v40 = vmul.f32 %v631_v32, %v482_v38  ;;  %661 = vst [vmem:[%s1311_s9 + $0x38] sm:$0xff] %v645_v35 }
 0x13d   : > { %669 = vst [vmem:[%s1311_s9 + $0x78] sm:$0xff] %v653_v36  ;;  %660 = vst [vmem:[%s1311_s9 + $0x30] sm:$0xff] %v644_v39 }
 0x13e   : > { %668 = vst [vmem:[%s1311_s9 + $0x70] sm:$0xff] %v652_v40 }
 0x13f   : > { %1073 = shalt.err (!%p1070_p6)
}
 0x140   : > { %s1074_s29 = scalar_lea.hbm %s1330_s19, 2048  ;;  %s1078_s5 = scalar_lea.hbm %s1389_s3, 4096 }
 0x141   : > { %p1075_p7 = scmp.ne.s32.totalorder %s1330_s19, %s1074_s29  ;;  %p1079_p0 = scmp.lt.u32.totalorder %s1330_s19, %s1389_s3 }
 0x142   : > { %p1080_p2 = scmp.lt.u32.totalorder %s1078_s5, %s1074_s29  ;;  %p1082_p8 = scmp.lt.u32.totalorder %s1074_s29, %s1330_s19 }
 0x143   : > { %p1076_p9 = pnand %p1075_p7, %p1401_p10 }
 0x144   : > { %p1081_p4 = por %p1080_p2, %p1079_p0 }
 0x145   : > { %p1077_p12 = pneg %p1076_p9 }
 0x146   : > { %p1083_p11 = por %p1082_p8, %p1081_p4 }
 0x148   : > { %p1084_p13 = pnand %p1083_p11, %p1077_p12 }
 0x14a   : > { %1087 = shalt.err (!%p1084_p13)
}
 0x14b   : > { %s1149_s8 = smov 128   ;;  %s1150_s9 = smov 8  }
 0x14c   : > { %963 = dma.vmem_to_hbm [thread:$0]  (%p1401_p10), %s1332_s11, 2048, %s1330_s19, %s1340_s21, %s1149_s8, %s1149_s8, %s1150_s9  }
 0x14d PF: > { %p975_p1 = scmp.ge.s32.totalorder %s1142_s17, 2  ;;  %s701_s10 = sand.u32 1, %s1122_s12  }
 0x14e   : > { %p1402_p3 = scmp.ne.s32.totalorder %s1395_s24, 0  ;;  %s702_s15 = scalar_lea.sflag [#allocation5], %s701_s10 }
 0x150   : > { %p970_p5 = pnand %p975_p1, %p1402_p3 }
 0x152   : > { %1117 = dma.done.wait (!%p970_p5), %s702_s15, 2048  }
 0x153   : > { %1119 = vsyncadd (!%p970_p5), %s702_s15, 4294965248  ;;  %s17_s17 = sadd.s32 1, %s1142_s17   ;;  %s1403_s12 = smov %s1126_s13 }
 0x154   : > { %p14_p6 = scmp.ge.s32.totalorder %s17_s17, 4   ;;  %s1404_s13 = smov %s1130_s14 }
 0x155   : > { %s1405_s14 = smov %s1224_s25  ;;  %s1406_s15 = smov %s1138_s16 }
 0x156   : > { %s1407_s16 = smov %s1409_s20  ;;  %16 = sbr.rel (!%p14_p6) target bundleno = 5 (0x5), region = 84 }
 0x15d   :  { %707 = vsyncpa [#allocation4], 1 }
 0x15e   :  { %709 = vsyncpa [#allocation4 + $0x1], 1 }
 0x15f   :  { %710 = vsyncpa [#allocation5], 1 }
 0x160   :  { %712 = vsyncpa [#allocation5 + $0x1], 1 }

</bundles_post_ra>
